<compile_context>
chip_gen: v7x
topology: tpu7x:2x2x1
jax: 0.10.0
libtpu: 0.0.40
codegen_flags: <defaults>
</compile_context>

<pallas_src>
import math
from functools import partial

import jax
import jax.numpy as jnp
from jax import lax
from jax.experimental import pallas as pl
from jax.experimental.pallas import tpu as pltpu

_INV_SQRT2 = 1.0 / math.sqrt(2.0)


def _ffn_kernel(x_ref, w1t_ref, w2t_ref, o_ref, acc_ref):
    # x_ref:   (tm, d_model)
    # w1t_ref: (d_model, tff)   == slice of w1.weight.T
    # w2t_ref: (tff, d_model)   == slice of w2.weight.T
    # acc_ref: (tm, d_model) f32 accumulator, resident across the ff axis
    j = pl.program_id(1)

    h = jnp.dot(x_ref[...], w1t_ref[...], preferred_element_type=jnp.float32)
    # exact GELU: 0.5 * h * (1 + erf(h / sqrt(2)))  (matches nn.GELU default)
    h = 0.5 * h * (1.0 + lax.erf(h * _INV_SQRT2))
    y_part = jnp.dot(h.astype(w2t_ref.dtype), w2t_ref[...],
                     preferred_element_type=jnp.float32)

    @pl.when(j == 0)
    def _():
        acc_ref[...] = y_part          # direct write; no zero-init + RMW pass

    @pl.when(j > 0)
    def _():
        acc_ref[...] += y_part

    @pl.when(j == pl.num_programs(1) - 1)
    def _():
        o_ref[...] = acc_ref[...].astype(o_ref.dtype)


def _round_up(a, b):
    return ((a + b - 1) // b) * b


def _vmem_capacity_bytes():
    """Physical VMEM per TensorCore; conservative fallback = v7x (64 MiB)."""
    try:
        info = pltpu.get_tpu_info()
        for attr in ("vmem_capacity_bytes", "vmem_size_bytes", "vmem_bytes"):
            cap = getattr(info, attr, None)
            if cap:
                return int(cap)
    except Exception:
        pass
    return 64 << 20


def _tile_vmem_bytes(tm, tff, d_model, bx, bw):
    # double-buffered x / w1t / w2t / out tiles + resident f32 accumulator
    # + f32 intermediates (h and the per-step partial product).
    return (2 * (tm * d_model * bx
                 + d_model * tff * bw
                 + tff * d_model * bw
                 + tm * d_model * bx)
            + tm * d_model * 4
            + tm * tff * 4
            + tm * d_model * 4)


def _pick_tiles(n, d_model, d_ff, bx, bw, budget, tm_max):
    """Largest (tm, tff) that fits the VMEM budget; tm is the primary lever
    (arithmetic intensity on the weight stream ~ tm flops/byte)."""
    n8 = _round_up(max(n, 1), 8)
    tm_cap = min(_round_up(tm_max, 8), n8)
    # Keep >= 2 row tiles when there is enough work so both TensorCores eat.
    if n8 >= 256:
        tm_cap = min(tm_cap, max(128, _round_up(pl.cdiv(n8, 2), 8)))
    tff_cands = [c for c in (1024, 512, 256, 128) if d_ff % c == 0] or [d_ff]
    tm_cands = sorted(
        {tm_cap} | {c for c in (1024, 512, 256, 128, 64, 32, 16, 8) if c <= tm_cap},
        reverse=True)
    for tm in tm_cands:
        for tff in tff_cands:          # prefer larger tff (bigger weight DMAs)
            if _tile_vmem_bytes(tm, tff, d_model, bx, bw) <= budget:
                return tm, tff
    return tm_cands[-1], tff_cands[-1]


def prepare_ffn_weights(w1, w2, dtype=None):
    """One-time weight relayout (cache the result; do NOT redo per call):
    transpose nn.Linear weights, pad d_ff to a multiple of 128 (zero
    columns/rows -> exact, since gelu(0) = 0), optionally cast (e.g. bf16)
    for bandwidth-bound serving."""
    w1t = jnp.asarray(w1).T   # (d_model, d_ff)
    w2t = jnp.asarray(w2).T   # (d_ff, d_model)
    pad = (-w1t.shape[1]) % 128
    if pad:
        w1t = jnp.pad(w1t, ((0, 0), (0, pad)))
        w2t = jnp.pad(w2t, ((0, pad), (0, 0)))
    if dtype is not None:
        w1t = w1t.astype(dtype)
        w2t = w2t.astype(dtype)
    return w1t, w2t


@partial(jax.jit, static_argnames=("tm",))
def feed_forward_from_transposed(x, w1t, w2t, *, tm=None):
    """x: (..., d_model); w1t: (d_model, d_ff); w2t: (d_ff, d_model)."""
    d_model, d_ff = w1t.shape
    orig_shape = x.shape
    x2d = x.reshape(-1, d_model)
    n = x2d.shape[0]

    bx = jnp.dtype(x.dtype).itemsize
    bw = jnp.dtype(w1t.dtype).itemsize

    vmem_cap = _vmem_capacity_bytes()
    budget = int(vmem_cap * 0.85)
    tm_max = tm if tm is not None else (1024 if vmem_cap >= (96 << 20) else 512)
    tm_eff, tff = _pick_tiles(n, d_model, d_ff, bx, bw, budget, tm_max)

    grid_i = pl.cdiv(n, tm_eff)          # partial last row block handled by Pallas
    grid_j = pl.cdiv(d_ff, tff)          # tff divides d_ff by construction
    grid = (grid_i, grid_j)

    est = _tile_vmem_bytes(tm_eff, tff, d_model, bx, bw)
    vmem_limit = int(min(max(est * 5 // 4, 16 << 20), budget))

    # Honest memory picture: weights are re-streamed once per row tile.
    cost = pl.CostEstimate(
        flops=4 * n * d_model * d_ff,
        transcendentals=n * d_ff,
        bytes_accessed=(2 * n * d_model * bx
                        + grid_i * 2 * d_model * d_ff * bw),
    )

    # TODO(synk): in weight-BW-bound decode regimes (grid_i == 1), consider
    # pipeline_mode=pl.Buffered(3) on the weight BlockSpecs if VMEM allows.
    out = pl.pallas_call(
        _ffn_kernel,
        out_shape=jax.ShapeDtypeStruct((n, d_model), x.dtype),
        grid_spec=pltpu.PrefetchScalarGridSpec(
            num_scalar_prefetch=0,
            grid=grid,
            in_specs=[
                pl.BlockSpec((tm_eff, d_model), lambda i, j: (i, 0)),
                pl.BlockSpec((d_model, tff), lambda i, j: (0, j)),
                pl.BlockSpec((tff, d_model), lambda i, j: (j, 0)),
            ],
            out_specs=pl.BlockSpec((tm_eff, d_model), lambda i, j: (i, 0)),
            scratch_shapes=[pltpu.VMEM((tm_eff, d_model), jnp.float32)],
        ),
        compiler_params=pltpu.CompilerParams(
            dimension_semantics=("parallel", "arbitrary"),
            vmem_limit_bytes=vmem_limit,
        ),
        cost_estimate=cost,
    )(x2d, w1t, w2t)

    return out.reshape(orig_shape)


def feed_forward(x, w1, w2, *, tm=None):
    """Convenience wrapper taking nn.Linear-shaped weights:
    w1: (d_ff, d_model), w2: (d_model, d_ff).
    For repeated calls, call prepare_ffn_weights() once and use
    feed_forward_from_transposed() to avoid per-call weight relayout."""
    w1t, w2t = prepare_ffn_weights(w1, w2)
    return feed_forward_from_transposed(x, w1t, w2t, tm=tm)


def feed_forward_ref(x, w1, w2):
    h = jnp.dot(x, w1.T)
    h = 0.5 * h * (1.0 + lax.erf(h * _INV_SQRT2))
    return jnp.dot(h, w2.T)


if __name__ == "__main__":
    # f32 test at full matmul precision so kernel vs. reference match tightly;
    # production would typically use bf16 weights (prepare_ffn_weights dtype=).
    jax.config.update("jax_default_matmul_precision", "highest")

    batch, seq, d_model, d_ff = 2, 8, 32, 128

    key = jax.random.PRNGKey(0)
    kx, k1, k2 = jax.random.split(key, 3)
    x = jax.random.normal(kx, (batch, seq, d_model), dtype=jnp.float32)
    # nn.Linear weight shapes: (out_features, in_features)
    w1 = jax.random.normal(k1, (d_ff, d_model), dtype=jnp.float32) * (1.0 / math.sqrt(d_model))
    w2 = jax.random.normal(k2, (d_model, d_ff), dtype=jnp.float32) * (1.0 / math.sqrt(d_ff))

    # Pre-transpose / pad once (outside the hot path), then run the kernel.
    w1t, w2t = prepare_ffn_weights(w1, w2)
    out = jax.block_until_ready(feed_forward_from_transposed(x, w1t, w2t))

    ref = feed_forward_ref(x, w1, w2)
    assert out.shape == x.shape
    assert jnp.allclose(out, ref, atol=1e-4, rtol=1e-4)
    print("KERNEL_OK")
</pallas_src>

<mosaic_0001>
module attributes {stable_mosaic.version = 11 : i64} {
  func.func @_ffn_kernel(%arg0: i32, %arg1: i32, %arg2: memref<16x32xf32, #tpu.memory_space<vmem>>, %arg3: memref<32x128xf32, #tpu.memory_space<vmem>>, %arg4: memref<128x32xf32, #tpu.memory_space<vmem>>, %arg5: memref<16x32xf32, #tpu.memory_space<vmem>>, %arg6: memref<16x32xf32, #tpu.memory_space<vmem>>) attributes {dimension_semantics = [#tpu.dimension_semantics<parallel>, #tpu.dimension_semantics<arbitrary>], iteration_bounds = array<i64: 1, 1>, scalar_prefetch = 0 : i64, scratch_operands = 1 : i64, tpu.core_type = #tpu.core_type<tc>, window_params = [{transform_indices = @transform_0, window_bounds = array<i64: 16, 32>}, {transform_indices = @transform_1, window_bounds = array<i64: 32, 128>}, {transform_indices = @transform_2, window_bounds = array<i64: 128, 32>}, {transform_indices = @transform_3, window_bounds = array<i64: 16, 32>}]} {
    %c0 = arith.constant 0 : index
    %c0_0 = arith.constant 0 : index
    %0 = vector.load %arg2[%c0, %c0_0] : memref<16x32xf32, #tpu.memory_space<vmem>>, vector<16x32xf32>
    %c0_1 = arith.constant 0 : index
    %c0_2 = arith.constant 0 : index
    %1 = vector.load %arg3[%c0_1, %c0_2] : memref<32x128xf32, #tpu.memory_space<vmem>>, vector<32x128xf32>
    %cst = arith.constant dense<0.000000e+00> : vector<16x128xf32>
    %2 = tpu.matmul %0, %1, %cst {dimension_numbers = #tpu.dot_dimension_numbers<[1], [0], [0], [1], [0, 0, 1, 1], [], []>, precision = #tpu.contract_precision<fp32>} : vector<16x32xf32>, vector<32x128xf32>, vector<16x128xf32> -> vector<16x128xf32>
    %cst_3 = arith.constant 5.000000e-01 : f32
    %3 = vector.broadcast %cst_3 : f32 to vector<16x128xf32>
    %4 = arith.mulf %3, %2 : vector<16x128xf32>
    %cst_4 = arith.constant 0.707106769 : f32
    %5 = vector.broadcast %cst_4 : f32 to vector<16x128xf32>
    %6 = arith.mulf %2, %5 : vector<16x128xf32>
    %7 = math.erf %6 : vector<16x128xf32>
    %cst_5 = arith.constant 1.000000e+00 : f32
    %8 = vector.broadcast %cst_5 : f32 to vector<16x128xf32>
    %9 = arith.addf %8, %7 : vector<16x128xf32>
    %10 = arith.mulf %4, %9 : vector<16x128xf32>
    %c0_6 = arith.constant 0 : index
    %c0_7 = arith.constant 0 : index
    %11 = vector.load %arg4[%c0_6, %c0_7] : memref<128x32xf32, #tpu.memory_space<vmem>>, vector<128x32xf32>
    %cst_8 = arith.constant dense<0.000000e+00> : vector<16x32xf32>
    %12 = tpu.matmul %10, %11, %cst_8 {dimension_numbers = #tpu.dot_dimension_numbers<[1], [0], [0], [1], [0, 0, 1, 1], [], []>, precision = #tpu.contract_precision<fp32>} : vector<16x128xf32>, vector<128x32xf32>, vector<16x32xf32> -> vector<16x32xf32>
    %c0_i32 = arith.constant 0 : i32
    %13 = arith.cmpi eq, %arg1, %c0_i32 : i32
    %14 = arith.extui %13 : i1 to i32
    %c0_i32_9 = arith.constant 0 : i32
    %15 = arith.cmpi ne, %14, %c0_i32_9 : i32
    scf.if %15 {
      %c0_14 = arith.constant 0 : index
      %c0_15 = arith.constant 0 : index
      %22 = vector.load %arg6[%c0_14, %c0_15] : memref<16x32xf32, #tpu.memory_space<vmem>>, vector<16x32xf32>
      tpu.vector_store %arg6[%c0_14, %c0_15], %12 {strides = array<i32>} : memref<16x32xf32, #tpu.memory_space<vmem>>, vector<16x32xf32>,
    } else {
    }
    %c0_i32_10 = arith.constant 0 : i32
    %16 = arith.cmpi sgt, %arg1, %c0_i32_10 : i32
    %17 = arith.extui %16 : i1 to i32
    %c0_i32_11 = arith.constant 0 : i32
    %18 = arith.cmpi ne, %17, %c0_i32_11 : i32
    scf.if %18 {
      %c0_14 = arith.constant 0 : index
      %c0_15 = arith.constant 0 : index
      %22 = vector.load %arg6[%c0_14, %c0_15] : memref<16x32xf32, #tpu.memory_space<vmem>>, vector<16x32xf32>
      %23 = arith.addf %22, %12 : vector<16x32xf32>
      %c0_16 = arith.constant 0 : index
      %c0_17 = arith.constant 0 : index
      %24 = vector.load %arg6[%c0_16, %c0_17] : memref<16x32xf32, #tpu.memory_space<vmem>>, vector<16x32xf32>
      tpu.vector_store %arg6[%c0_16, %c0_17], %23 {strides = array<i32>} : memref<16x32xf32, #tpu.memory_space<vmem>>, vector<16x32xf32>,
    } else {
    }
    %c0_i32_12 = arith.constant 0 : i32
    %19 = arith.cmpi eq, %arg1, %c0_i32_12 : i32
    %20 = arith.extui %19 : i1 to i32
    %c0_i32_13 = arith.constant 0 : i32
    %21 = arith.cmpi ne, %20, %c0_i32_13 : i32
    scf.if %21 {
      %c0_14 = arith.constant 0 : index
      %c0_15 = arith.constant 0 : index
      %22 = vector.load %arg6[%c0_14, %c0_15] : memref<16x32xf32, #tpu.memory_space<vmem>>, vector<16x32xf32>
      %c0_16 = arith.constant 0 : index
      %c0_17 = arith.constant 0 : index
      %23 = vector.load %arg5[%c0_16, %c0_17] : memref<16x32xf32, #tpu.memory_space<vmem>>, vector<16x32xf32>
      tpu.vector_store %arg5[%c0_16, %c0_17], %22 {strides = array<i32>} : memref<16x32xf32, #tpu.memory_space<vmem>>, vector<16x32xf32>,
    } else {
    }
    return
  }
  func.func @transform_0(%arg0: i32, %arg1: i32) -> (i32, i32) {
    %c0_i32 = arith.constant 0 : i32
    %c0_i32_0 = arith.constant 0 : i32
    return %arg0, %c0_i32 : i32, i32
  }
  func.func @transform_1(%arg0: i32, %arg1: i32) -> (i32, i32) {
    %c0_i32 = arith.constant 0 : i32
    %c0_i32_0 = arith.constant 0 : i32
    return %c0_i32, %arg1 : i32, i32
  }
  func.func @transform_2(%arg0: i32, %arg1: i32) -> (i32, i32) {
    %c0_i32 = arith.constant 0 : i32
    %c0_i32_0 = arith.constant 0 : i32
    return %arg1, %c0_i32 : i32, i32
  }
  func.func @transform_3(%arg0: i32, %arg1: i32) -> (i32, i32) {
    %c0_i32 = arith.constant 0 : i32
    %c0_i32_0 = arith.constant 0 : i32
    return %arg0, %c0_i32 : i32, i32
  }
}

</mosaic_0001>

<bundles_post_ra>
// kernel: feed_forward_from_transposed.1
= control target key start
LH: loop header
LB: loop body
LE: loop exit
PB: predicated region body
PF: predicated region fallthrough
CT: control target
= control target key end

     0   :  { %vm21_vm0 = vcmask 261120   ;;  %s2433_s0 = inlined_call_operand.vmem [shape: f32[16,32], index: 0, kind: input, shape index: {}]   ;;  %s2434_s1 = inlined_call_operand.vmem [shape: f32[32,128], index: 1, kind: input, shape index: {}]   ;;  %s2435_s2 = inlined_call_operand.vmem [shape: f32[128,32], index: 2, kind: input, shape index: {}]   ;;  %s2436_s3 = inlined_call_operand.hbm [shape: f32[16,32], index: 3, kind: output, shape index: {}]  }
   0x1   :  { %v17_v0 = vld [vmem:[%s2434_s1] sm:$0xff]  ;;  %v18_v1 = vld [vmem:[%s2434_s1 + $0x8] sm:$0xff]  ;;  %v19_v2 = vld [vmem:[%s2434_s1 + $0x10] sm:$0xff] }
   0x2   :  { %v29_v3 = vand.u32 4294901760, %v17_v0  ;;  %v32_v4 = vand.u32 4294901760, %v18_v1  ;;  %v20_v5 = vld [vmem:[%s2434_s1 + $0x18] sm:$0xff]  ;;  %v35_v6 = vand.u32 4294901760, %v19_v2  ;;  %v15_v7 = vld [vmem:[%s2433_s0] sm:$0xff]  ;;  %v16_v8 = vld [vmem:[%s2433_s0 + $0x8] sm:$0xff] }
   0x3   :  { %v38_v9 = vand.u32 4294901760, %v20_v5  ;;  %v23_v10 = vsel %vm21_vm0, %v15_v7, 0  ;;  %v26_v11 = vsel %vm21_vm0, %v16_v8, 0  ;;  %v2078_v20 = vld [vmem:[%s2435_s2] sm:$0xff] }
   0x4   :  { %v2059_v12 = vpack.c.bf16 %v32_v4, %v29_v3  ;;  %v2061_v13 = vand.u32 4294901760, %v23_v10  ;;  %v2063_v14 = vand.u32 4294901760, %v26_v11  ;;  %v2065_v15 = vsub.f32 %v17_v0, %v29_v3 }
   0x5   :  { %v2067_v16 = vpack.c.bf16 %v38_v9, %v35_v6  ;;  %v2069_v17 = vsub.f32 %v18_v1, %v32_v4  ;;  %v2071_v18 = vsub.f32 %v19_v2, %v35_v6  ;;  %v2073_v19 = vsub.f32 %v20_v5, %v38_v9 }
   0x6   :  { %8 = vsyncpa [#allocation4], 0  ;;  %1726 = vmatprep.subr.bf16.mxu0 %v2059_v12  ;;  %v2082_v21 = vsub.f32 %v23_v10, %v2061_v13  ;;  %v2085_v22 = vsub.f32 %v26_v11, %v2063_v14  ;;  %v120_v23 = vand.u32 4294901760, %v2065_v15  ;;  %v2101_v30 = vld [vmem:[%s2435_s2 + $0x8] sm:$0xff]  ;;  %v583_v31 = vand.u32 4294901760, %v2078_v20  ;;  %v2116_v35 = vld [vmem:[%s2435_s2 + $0x10] sm:$0xff] }
   0x7   :  { %1728 = vmatpush3.bf16.msra.mxu0 %v2059_v12  ;;  %v127_v24 = vand.u32 4294901760, %v2069_v17  ;;  %v134_v25 = vand.u32 4294901760, %v2071_v18  ;;  %v141_v26 = vand.u32 4294901760, %v2073_v19  ;;  %v2125_v39 = vld [vmem:[%s2435_s2 + $0x18] sm:$0xff]  ;;  %v586_v43 = vand.u32 4294901760, %v2101_v30  ;;  %v2132_v44 = vld [vmem:[%s2435_s2 + $0x20] sm:$0xff] }
   0x8   :  { %1730 = vmatprep.subr.bf16.mxu0 %v2067_v16  ;;  %v99_v27 = vand.u32 4294901760, %v2082_v21  ;;  %v109_v28 = vand.u32 4294901760, %v2085_v22  ;;  %v121_v29 = vsub.f32 %v2065_v15, %v120_v23  ;;  %v2137_v45 = vld [vmem:[%s2435_s2 + $0x28] sm:$0xff]  ;;  %v2142_v48 = vsub.f32 %v2078_v20, %v583_v31  ;;  %v572_v6 = vld [vmem:[%s2435_s2 + $0x30] sm:$0xff]  ;;  %v573_v7 = vld [vmem:[%s2435_s2 + $0x38] sm:$0xff] }
   0x9   :  { %v128_v32 = vsub.f32 %v2069_v17, %v127_v24  ;;  %v135_v33 = vsub.f32 %v2071_v18, %v134_v25  ;;  %v142_v34 = vsub.f32 %v2073_v19, %v141_v26  ;;  %v589_v49 = vand.u32 4294901760, %v2116_v35  ;;  %v577_v20 = vld [vmem:[%s2435_s2 + $0x58] sm:$0xff] }
   0xa   :  { %v100_v36 = vsub.f32 %v2082_v21, %v99_v27  ;;  %v110_v37 = vsub.f32 %v2085_v22, %v109_v28  ;;  %v122_v38 = vand.u32 4294901760, %v121_v29  ;;  %v2146_v52 = vsub.f32 %v2101_v30, %v586_v43 }
   0xb   :  { %1732 = vmatpush3.bf16.msra.mxu0 %v2067_v16  ;;  %v129_v40 = vand.u32 4294901760, %v128_v32  ;;  %v136_v41 = vand.u32 4294901760, %v135_v33  ;;  %v143_v42 = vand.u32 4294901760, %v142_v34  ;;  %v592_v53 = vand.u32 4294901760, %v2125_v39 }
   0xc   :  { %v101_v46 = vand.u32 4294901760, %v100_v36  ;;  %v111_v47 = vand.u32 4294901760, %v110_v37  ;;  %v2150_v54 = vsub.f32 %v2116_v35, %v589_v49  ;;  %v595_v55 = vand.u32 4294901760, %v2132_v44  ;;  %v580_v35 = vld [vmem:[%s2435_s2 + $0x70] sm:$0xff]  ;;  %v581_v36 = vld [vmem:[%s2435_s2 + $0x78] sm:$0xff] }
   0xd   :  { %v1733_v50 = vpack.c.bf16 %v129_v40, %v122_v38  ;;  %v1737_v51 = vpack.c.bf16 %v143_v42, %v136_v41  ;;  %v598_v56 = vand.u32 4294901760, %v2137_v45  ;;  %v1837_v57 = vpack.c.bf16 %v2146_v52, %v2142_v48 }
   0xe   :  { %1457 = vmatprep.mubr.f32.mxu0 %v101_v46  ;;  %v2158_v58 = vsub.f32 %v2125_v39, %v592_v53  ;;  %v1741_v59 = vpack.c.bf16 %v2069_v17, %v2065_v15  ;;  %v2163_v60 = vsub.f32 %v2132_v44, %v595_v55  ;;  %v1745_v0 = vpack.c.bf16 %v2073_v19, %v2071_v18  ;;  %v576_v19 = vld [vmem:[%s2435_s2 + $0x50] sm:$0xff] }
   0xf   :  { %1458 = vmatmul.mubr.f32.vlgmr.msra.gmra.mrb[0].mxu0 %v111_v47  ;;  %1734 = vmatprep.subr.bf16.mxu0 %v1733_v50  ;;  %v2166_v61 = vsub.f32 %v2137_v45, %v598_v56  ;;  %v1757_v1 = vpack.c.bf16 %v127_v24, %v120_v23  ;;  %v1761_v2 = vpack.c.bf16 %v141_v26, %v134_v25  ;;  %v601_v8 = vand.u32 4294901760, %v572_v6 }
  0x10   :  { %1736 = vmatpush3.bf16.msra.mxu0 %v1733_v50  ;;  %1468 = vmatprep.mubr.f32.mxu0 %v2061_v13  ;;  %v1841_v62 = vpack.c.bf16 %v2158_v58, %v2150_v54  ;;  %v2199_v3 = vpack.c.bf16 %v586_v43, %v583_v31  ;;  %v2202_v4 = vpack.c.bf16 %v592_v53, %v589_v49  ;;  %v604_v9 = vand.u32 4294901760, %v573_v7 }
  0x11   :  { %1738 = vmatprep.subr.bf16.mxu0 %v1737_v51  ;;  %1838 = vmatprep.subr.bf16.mxu1 %v1837_v57  ;;  %v1845_v63 = vpack.c.bf16 %v2166_v61, %v2163_v60  ;;  %v2207_v5 = vpack.c.bf16 %v598_v56, %v595_v55  ;;  %v2219_v10 = vsub.f32 %v572_v6, %v601_v8  ;;  %v616_v23 = vand.u32 4294901760, %v577_v20 }
  0x12   :  { %1840 = vmatpush3.bf16.msra.mxu1 %v1837_v57  ;;  %v2221_v11 = vsub.f32 %v573_v7, %v604_v9  ;;  %v2243_v24 = vpack.c.bf16 %v604_v9, %v601_v8  ;;  %v625_v38 = vand.u32 4294901760, %v580_v35  ;;  %v628_v39 = vand.u32 4294901760, %v581_v36 }
  0x13   :  { %1842 = vmatprep.subr.bf16.mxu1 %v1841_v62  ;;  %v2247_v26 = vsub.f32 %v577_v20, %v616_v23  ;;  %v686_v46 = vand.u32 4294901760, %v2142_v48  ;;  %v693_v47 = vand.u32 4294901760, %v2146_v52  ;;  %v728_v56 = vand.u32 4294901760, %v2219_v10 }
  0x14   :  { %1740 = vmatpush3.bf16.msra.mxu0 %v1737_v51  ;;  %v2277_v41 = vsub.f32 %v580_v35, %v625_v38  ;;  %v2279_v42 = vsub.f32 %v581_v36, %v628_v39  ;;  %v2287_v45 = vpack.c.bf16 %v628_v39, %v625_v38  ;;  %v735_v57 = vand.u32 4294901760, %v2221_v11 }
  0x15   :  { %1742 = vmatprep.subr.bf16.mxu0 %v1741_v59  ;;  %v687_v49 = vsub.f32 %v2142_v48, %v686_v46  ;;  %v694_v50 = vsub.f32 %v2146_v52, %v693_v47 }
  0x16   :  { %1844 = vmatpush3.bf16.msra.mxu1 %v1841_v62  ;;  %v1865_v43 = vpack.c.bf16 %v2279_v42, %v2277_v41  ;;  %v736_v62 = vsub.f32 %v2221_v11, %v735_v57 }
  0x17   :  { %1469 = vmatmul.mubr.f32.vlgmr.msra.gmra.mrb[0].mxu0 %v2063_v14  ;;  %1846 = vmatprep.subr.bf16.mxu1 %v1845_v63  ;;  %v688_v51 = vand.u32 4294901760, %v687_v49  ;;  %v695_v53 = vand.u32 4294901760, %v694_v50 }
  0x18   :  { %1744 = vmatpush3.bf16.msra.mxu0 %v1741_v59  ;;  %1479 = vmatprep.mubr.f32.mxu0 %v2082_v21  ;;  %v729_v59 = vsub.f32 %v2219_v10, %v728_v56  ;;  %v737_v48 = vand.u32 4294901760, %v736_v62 }
  0x19   :  { %1746 = vmatprep.subr.bf16.mxu0 %v1745_v0  ;;  %v2298_v55 = vpack.c.bf16 %v695_v53, %v688_v51 }
  0x1a   :  { %1848 = vmatpush3.bf16.msra.mxu1 %v1845_v63  ;;  %v730_v63 = vand.u32 4294901760, %v729_v59  ;;  %v707_v59 = vand.u32 4294901760, %v2158_v58 }
  0x1c   :  { %1748 = vmatpush3.bf16.msra.mxu0 %v1745_v0 }
  0x1d   :  { %1750 = vmatprep.subr.bf16.mxu0 %v2059_v12 }
  0x1f   :  { %1480 = vmatmul.mubr.f32.vlgmr.msra.gmra.mrb[0].mxu0 %v2085_v22  ;;  %v613_v22 = vand.u32 4294901760, %v576_v19 }
  0x20   :  { %1752 = vmatpush3.bf16.msra.mxu0 %v2059_v12  ;;  %1490 = vmatprep.mubr.f32.mxu0 %v99_v27  ;;  %v578_v27 = vld [vmem:[%s2435_s2 + $0x60] sm:$0xff] }
  0x21   :  { %1754 = vmatprep.subr.bf16.mxu0 %v2067_v16  ;;  %v2245_v25 = vsub.f32 %v576_v19, %v613_v22  ;;  %v619_v30 = vand.u32 4294901760, %v578_v27  ;;  %v2275_v40 = vpack.c.bf16 %v616_v23, %v613_v22  ;;  %v784_v23 = vand.u32 4294901760, %v2277_v41 }
  0x23   :  { %v1857_v29 = vpack.c.bf16 %v2247_v26, %v2245_v25  ;;  %v2261_v33 = vsub.f32 %v578_v27, %v619_v30  ;;  %v756_v9 = vand.u32 4294901760, %v2245_v25 }
  0x24   :  { %1756 = vmatpush3.bf16.msra.mxu0 %v2067_v16 }
  0x25   :  { %1758 = vmatprep.subr.bf16.mxu0 %v1757_v1 }
  0x27   :  { %1491 = vmatmul.mubr.f32.vlgmr.msra.gmra.mrb[0].mxu0 %v109_v28  ;;  %v579_v28 = vld [vmem:[%s2435_s2 + $0x68] sm:$0xff] }
  0x28   :  { %1760 = vmatpush3.bf16.msra.mxu0 %v1757_v1  ;;  %1501 = vmatprep.mubr.f32.mxu0 %v2061_v13  ;;  %v622_v31 = vand.u32 4294901760, %v579_v28  ;;  %v2307_v1 = vpack.c.bf16 %v737_v48, %v730_v63 }
  0x29   :  { %1762 = vmatprep.subr.bf16.mxu0 %v1761_v2 }
  0x2a   :  { %v2263_v34 = vsub.f32 %v579_v28, %v622_v31  ;;  %v2285_v44 = vpack.c.bf16 %v622_v31, %v619_v30 }
  0x2c   :  { %1764 = vmatpush3.bf16.msra.mxu0 %v1761_v2  ;;  %v1861_v37 = vpack.c.bf16 %v2263_v34, %v2261_v33 }
  0x2d   :  { %1766 = vmatprep.subr.bf16.mxu0 %v2059_v12 }
  0x2f   :  { %1502 = vmatmul.mubr.f32.vlgmr.msra.gmra.mrb[0].mxu0 %v2063_v14 }
  0x30   :  { %1768 = vmatpush3.bf16.msra.mxu0 %v2059_v12  ;;  %1512 = vmatprep.mubr.f32.mxu0 %v2061_v13  ;;  %v574_v12 = vld [vmem:[%s2435_s2 + $0x40] sm:$0xff]  ;;  %v575_v13 = vld [vmem:[%s2435_s2 + $0x48] sm:$0xff]  ;;  %s2016_s2 = smov [#allocation3]  }
  0x31   :  { %1770 = vmatprep.subr.bf16.mxu0 %v2067_v16  ;;  %v607_v15 = vand.u32 4294901760, %v574_v12  ;;  %s1294_s25 = sshll.u32 %s2016_s2, 4  ;;  %s1295_s25 = int_to_ptr.vmem [resolvable:$true] %s1294_s25 }
  0x32   :  { %s1992_s26 = scalar_lea.vmem %s1295_s25, 256  ;;  %p1997_p1 = scmp.lt.s32.totalorder %s1295_s25, %s1295_s25 }
  0x33   :  { %v2231_v17 = vsub.f32 %v574_v12, %v607_v15  ;;  %p1993_p0 = scmp.ne.s32.totalorder %s1295_s25, %s1992_s26  ;;  %p1998_p2 = scmp.lt.s32.totalorder %s1992_s26, %s1992_s26 }
  0x34   :  { %1772 = vmatpush3.bf16.msra.mxu0 %v2067_v16  ;;  %v610_v16 = vand.u32 4294901760, %v575_v13 }
  0x35   :  { %1774 = vmatprep.subr.bf16.mxu0 %v2199_v3  ;;  %v742_v52 = vand.u32 4294901760, %v2231_v17  ;;  %p1999_p3 = por %p1998_p2, %p1997_p1 }
  0x36   :  { %v2233_v18 = vsub.f32 %v575_v13, %v610_v16  ;;  %v2259_v32 = vpack.c.bf16 %v610_v16, %v607_v15  ;;  %v770_v16 = vand.u32 4294901760, %v2261_v33 }
  0x37   :  { %1513 = vmatmul.mubr.f32.vlgmr.msra.gmra.mrb[0].mxu0 %v2063_v14  ;;  %v1849_v14 = vpack.c.bf16 %v2221_v11, %v2219_v10  ;;  %v743_v2 = vsub.f32 %v2231_v17, %v742_v52  ;;  %v763_v10 = vand.u32 4294901760, %v2247_v26  ;;  %v757_v11 = vsub.f32 %v2245_v25, %v756_v9  ;;  %p2000_p4 = pnand %p1999_p3, %p1993_p0 }
  0x38   :  { %1776 = vmatpush3.bf16.msra.mxu0 %v2199_v3  ;;  %v1853_v21 = vpack.c.bf16 %v2233_v18, %v2231_v17  ;;  %v749_v0 = vand.u32 4294901760, %v2233_v18  ;;  %v777_v17 = vand.u32 4294901760, %v2263_v34  ;;  %v791_v25 = vand.u32 4294901760, %v2279_v42 }
  0x39   :  { %1778 = vmatprep.subr.bf16.mxu0 %v2202_v4  ;;  %1850 = vmatprep.subr.bf16.mxu1 %v1849_v14  ;;  %v744_v7 = vand.u32 4294901760, %v743_v2  ;;  %v764_v13 = vsub.f32 %v2247_v26, %v763_v10  ;;  %v785_v26 = vsub.f32 %v2277_v41, %v784_v23  ;;  %v2337_v36 = vpack.c.bf16 %v763_v10, %v756_v9 }
  0x3a   :  { %1852 = vmatpush3.bf16.msra.mxu1 %v1849_v14  ;;  %v750_v6 = vsub.f32 %v2233_v18, %v749_v0  ;;  %v758_v14 = vand.u32 4294901760, %v757_v11  ;;  %v771_v18 = vsub.f32 %v2261_v33, %v770_v16  ;;  %v778_v20 = vsub.f32 %v2263_v34, %v777_v17 }
  0x3b   :  { %1854 = vmatprep.subr.bf16.mxu1 %v1853_v21  ;;  %v765_v15 = vand.u32 4294901760, %v764_v13  ;;  %v792_v28 = vsub.f32 %v2279_v42, %v791_v25  ;;  %v786_v30 = vand.u32 4294901760, %v785_v26  ;;  %v2333_v33 = vpack.c.bf16 %v735_v57, %v728_v56 }
  0x3c   :  { %1780 = vmatpush3.bf16.msra.mxu0 %v2202_v4  ;;  %v751_v8 = vand.u32 4294901760, %v750_v6  ;;  %v779_v22 = vand.u32 4294901760, %v778_v20  ;;  %v2335_v34 = vpack.c.bf16 %v749_v0, %v742_v52  ;;  %v2341_v38 = vpack.c.bf16 %v791_v25, %v784_v23 }
  0x3d   :  { %1782 = vmatprep.subr.bf16.mxu0 %v2207_v5  ;;  %v2319_v19 = vpack.c.bf16 %v765_v15, %v758_v14  ;;  %v793_v31 = vand.u32 4294901760, %v792_v28  ;;  %v700_v56 = vand.u32 4294901760, %v2150_v54  ;;  %v708_v2 = vsub.f32 %v2158_v58, %v707_v59 }
  0x3e   :  { %1856 = vmatpush3.bf16.msra.mxu1 %v1853_v21  ;;  %v2313_v12 = vpack.c.bf16 %v751_v8, %v744_v7  ;;  %v772_v21 = vand.u32 4294901760, %v771_v18  ;;  %v714_v6 = vand.u32 4294901760, %v2163_v60  ;;  %v721_v7 = vand.u32 4294901760, %v2166_v61 }
  0x3f   :  { %1858 = vmatprep.subr.bf16.mxu1 %v1857_v29  ;;  %v2331_v35 = vpack.c.bf16 %v793_v31, %v786_v30  ;;  %v701_v52 = vsub.f32 %v2150_v54, %v700_v56  ;;  %v709_v14 = vand.u32 4294901760, %v708_v2 }
  0x40   :  { %1784 = vmatpush3.bf16.msra.mxu0 %v2207_v5  ;;  %v2325_v27 = vpack.c.bf16 %v779_v22, %v772_v21  ;;  %v715_v15 = vsub.f32 %v2163_v60, %v714_v6  ;;  %v722_v54 = vsub.f32 %v2166_v61, %v721_v7  ;;  %v1905_v61 = vpack.c.bf16 %v707_v59, %v700_v56 }
  0x41   :  { %1786 = vmatprep.subr.bf16.mxu0 %v2243_v24  ;;  %v702_v11 = vand.u32 4294901760, %v701_v52 }
  0x42   :  { %1860 = vmatpush3.bf16.msra.mxu1 %v1857_v29  ;;  %v2329_v29 = vpack.c.bf16 %v693_v47, %v686_v46  ;;  %v716_v20 = vand.u32 4294901760, %v715_v15  ;;  %v723_v21 = vand.u32 4294901760, %v722_v54 }
  0x43   :  { %1862 = vmatprep.subr.bf16.mxu1 %v1861_v37  ;;  %v1809_v18 = vpack.c.bf16 %v709_v14, %v702_v11 }
  0x44   :  { %1788 = vmatpush3.bf16.msra.mxu0 %v2243_v24  ;;  %v1813_v60 = vpack.c.bf16 %v723_v21, %v716_v20 }
  0x45   :  { %1790 = vmatprep.subr.bf16.mxu0 %v2259_v32 }
  0x46   :  { %1864 = vmatpush3.bf16.msra.mxu1 %v1861_v37  ;;  %v2339_v37 = vpack.c.bf16 %v777_v17, %v770_v16 }
  0x47   :  { %1866 = vmatprep.subr.bf16.mxu1 %v1865_v43 }
  0x48   :  { %1792 = vmatpush3.bf16.msra.mxu0 %v2259_v32 }
  0x49   :  { %1794 = vmatprep.subr.bf16.mxu0 %v2275_v40 }
  0x4a   :  { %1868 = vmatpush3.bf16.msra.mxu1 %v1865_v43 }
  0x4b   :  { %1870 = vmatprep.subr.bf16.mxu1 %v2199_v3 }
  0x4c   :  { %1796 = vmatpush3.bf16.msra.mxu0 %v2275_v40 }
  0x4d   :  { %1798 = vmatprep.subr.bf16.mxu0 %v2285_v44 }
  0x50   :  { %1800 = vmatpush3.bf16.msra.mxu0 %v2285_v44 }
  0x51   :  { %1802 = vmatprep.subr.bf16.mxu0 %v2287_v45 }
  0x54   :  { %1804 = vmatpush3.bf16.msra.mxu0 %v2287_v45 }
  0x55   :  { %1806 = vmatprep.subr.bf16.mxu0 %v2298_v55 }
 0x10a   :  { %v1514_v39 = vpop.f32.mrb[0].mxu0 }
 0x10b   :  { %v559_v41 = vmul.f32 0.70710677, %v1514_v39  ;;  %v546_v43 = vpop.f32.mrb[1].mxu0  ;;  %v557_v49 = vmul.f32 0.5, %v1514_v39 }
 0x10c   :  { %v558_v42 = vmul.f32 0.70710677, %v546_v43  ;;  %v556_v51 = vmul.f32 0.5, %v546_v43 }
 0x10d   :  { %1988 = verf.f32 %v559_v41 }
 0x10e   :  { %1990 = verf.f32 %v558_v42 }
 0x117   :  { %v1989_v46 = vpop.eup %1988 }
 0x118   :  { %v1991_v47 = vpop.eup %1990  ;;  %v563_v50 = vadd.f32 1.0, %v1989_v46 }
 0x119   :  { %v562_v53 = vadd.f32 1.0, %v1991_v47 }
 0x11a   :  { %v565_v57 = vmul.f32 %v563_v50, %v557_v49 }
 0x11b   :  { %v564_v62 = vmul.f32 %v562_v53, %v556_v51 }
 0x11c   :  { %v2345_v63 = vand.u32 4294901760, %v565_v57 }
 0x11d   :  { %v2347_v48 = vand.u32 4294901760, %v564_v62 }
 0x11e   :  { %v674_v0 = vsub.f32 %v565_v57, %v2345_v63 }
 0x11f   :  { %v664_v8 = vsub.f32 %v564_v62, %v2347_v48 }
 0x120   :  { %v675_v9 = vand.u32 4294901760, %v674_v0 }
 0x121   :  { %1617 = vmatprep.mubr.f32.mxu1 %v664_v8  ;;  %v665_v10 = vand.u32 4294901760, %v664_v8 }
 0x122   :  { %1618 = vmatmul.mubr.f32.vlgmr.msra.gmra.mrb[0].mxu1 %v674_v0  ;;  %v676_v13 = vsub.f32 %v674_v0, %v675_v9 }
 0x123   :  { %1872 = vmatpush3.bf16.msra.mxu1 %v2199_v3  ;;  %1652 = vmatprep.mubr.f32.mxu1 %v665_v10  ;;  %v666_v58 = vsub.f32 %v664_v8, %v665_v10 }
 0x124   :  { %1874 = vmatprep.subr.bf16.mxu1 %v2202_v4  ;;  %v677_v17 = vand.u32 4294901760, %v676_v13 }
 0x125   :  { %v667_v16 = vand.u32 4294901760, %v666_v58 }
 0x127   :  { %1876 = vmatpush3.bf16.msra.mxu1 %v2202_v4  ;;  %1547 = vmatprep.mubr.f32.mxu0 %v667_v16 }
 0x128   :  { %1548 = vmatmul.mubr.f32.vlgmr.msra.gmra.mrb[2].mxu0 %v677_v17  ;;  %1878 = vmatprep.subr.bf16.mxu1 %v2207_v5 }
 0x129   :  { %1808 = vmatpush3.bf16.msra.mxu0 %v2298_v55  ;;  %1582 = vmatprep.mubr.f32.mxu0 %v2347_v48  ;;  %v1909_v55 = vpack.c.bf16 %v721_v7, %v714_v6 }
 0x12a   :  { %1810 = vmatprep.subr.bf16.mxu0 %v1809_v18 }
 0x12b   :  { %1880 = vmatpush3.bf16.msra.mxu1 %v2207_v5 }
 0x12c   :  { %1882 = vmatprep.subr.bf16.mxu1 %v2243_v24 }
 0x12d   :  { %1812 = vmatpush3.bf16.msra.mxu0 %v1809_v18 }
 0x12e   :  { %1814 = vmatprep.subr.bf16.mxu0 %v1813_v60 }
 0x12f   :  { %1884 = vmatpush3.bf16.msra.mxu1 %v2243_v24 }
 0x130   :  { %1886 = vmatprep.subr.bf16.mxu1 %v2259_v32 }
 0x131   :  { %1816 = vmatpush3.bf16.msra.mxu0 %v1813_v60 }
 0x132   :  { %1818 = vmatprep.subr.bf16.mxu0 %v2307_v1 }
 0x133   :  { %1888 = vmatpush3.bf16.msra.mxu1 %v2259_v32 }
 0x134   :  { %1890 = vmatprep.subr.bf16.mxu1 %v2275_v40 }
 0x135   :  { %1820 = vmatpush3.bf16.msra.mxu0 %v2307_v1 }
 0x136   :  { %1822 = vmatprep.subr.bf16.mxu0 %v2313_v12 }
 0x137   :  { %1892 = vmatpush3.bf16.msra.mxu1 %v2275_v40 }
 0x138   :  { %1894 = vmatprep.subr.bf16.mxu1 %v2285_v44 }
 0x139   :  { %1824 = vmatpush3.bf16.msra.mxu0 %v2313_v12 }
 0x13a   :  { %1826 = vmatprep.subr.bf16.mxu0 %v2319_v19 }
 0x13b   :  { %1896 = vmatpush3.bf16.msra.mxu1 %v2285_v44 }
 0x13c   :  { %1898 = vmatprep.subr.bf16.mxu1 %v2287_v45 }
 0x13d   :  { %1828 = vmatpush3.bf16.msra.mxu0 %v2319_v19 }
 0x13e   :  { %1830 = vmatprep.subr.bf16.mxu0 %v2325_v27 }
 0x13f   :  { %1900 = vmatpush3.bf16.msra.mxu1 %v2287_v45 }
 0x140   :  { %1902 = vmatprep.subr.bf16.mxu1 %v2329_v29 }
 0x141   :  { %1832 = vmatpush3.bf16.msra.mxu0 %v2325_v27 }
 0x142   :  { %1653 = vmatmul.mubr.f32.vlgmr.msra.gmra.mrb[0].mxu1 %v675_v9  ;;  %1834 = vmatprep.subr.bf16.mxu0 %v2331_v35 }
 0x143   :  { %1904 = vmatpush3.bf16.msra.mxu1 %v2329_v29  ;;  %1687 = vmatprep.mubr.f32.mxu1 %v2347_v48 }
 0x144   :  { %1906 = vmatprep.subr.bf16.mxu1 %v1905_v61 }
 0x145   :  { %1836 = vmatpush3.bf16.msra.mxu0 %v2331_v35 }
 0x147   :  { %1908 = vmatpush3.bf16.msra.mxu1 %v1905_v61 }
 0x148   :  { %1583 = vmatmul.mubr.f32.vlgmr.msra.gmra.mrb[2].mxu0 %v2345_v63  ;;  %1910 = vmatprep.subr.bf16.mxu1 %v1909_v55 }
 0x14b   :  { %1912 = vmatpush3.bf16.msra.mxu1 %v1909_v55 }
 0x14c   :  { %1914 = vmatprep.subr.bf16.mxu1 %v2333_v33 }
 0x14f   :  { %1916 = vmatpush3.bf16.msra.mxu1 %v2333_v33 }
 0x150   :  { %1918 = vmatprep.subr.bf16.mxu1 %v2335_v34 }
 0x153   :  { %1920 = vmatpush3.bf16.msra.mxu1 %v2335_v34 }
 0x154   :  { %1922 = vmatprep.subr.bf16.mxu1 %v2337_v36 }
 0x157   :  { %1924 = vmatpush3.bf16.msra.mxu1 %v2337_v36 }
 0x158   :  { %1926 = vmatprep.subr.bf16.mxu1 %v2339_v37 }
 0x15b   :  { %1928 = vmatpush3.bf16.msra.mxu1 %v2339_v37 }
 0x15c   :  { %1930 = vmatprep.subr.bf16.mxu1 %v2341_v38 }
 0x15f   :  { %1932 = vmatpush3.bf16.msra.mxu1 %v2341_v38 }
 0x160   :  { %1934 = vmatprep.subr.bf16.mxu1 %v2199_v3 }
 0x162   :  { %1688 = vmatmul.mubr.f32.vlgmr.msra.gmra.mrb[0].mxu1 %v2345_v63 }
 0x163   :  { %1936 = vmatpush3.bf16.msra.mxu1 %v2199_v3  ;;  %1722 = vmatprep.mubr.f32.mxu1 %v2347_v48 }
 0x164   :  { %1938 = vmatprep.subr.bf16.mxu1 %v2202_v4 }
 0x167   :  { %1940 = vmatpush3.bf16.msra.mxu1 %v2202_v4 }
 0x168   :  { %1942 = vmatprep.subr.bf16.mxu1 %v2207_v5 }
 0x16b   :  { %1944 = vmatpush3.bf16.msra.mxu1 %v2207_v5 }
 0x16c   :  { %1946 = vmatprep.subr.bf16.mxu1 %v2243_v24 }
 0x16f   :  { %1948 = vmatpush3.bf16.msra.mxu1 %v2243_v24 }
 0x170   :  { %1950 = vmatprep.subr.bf16.mxu1 %v2259_v32 }
 0x173   :  { %1952 = vmatpush3.bf16.msra.mxu1 %v2259_v32 }
 0x174   :  { %1954 = vmatprep.subr.bf16.mxu1 %v2275_v40 }
 0x177   :  { %1956 = vmatpush3.bf16.msra.mxu1 %v2275_v40 }
 0x178   :  { %1958 = vmatprep.subr.bf16.mxu1 %v2285_v44 }
 0x17b   :  { %1960 = vmatpush3.bf16.msra.mxu1 %v2285_v44 }
 0x17c   :  { %1962 = vmatprep.subr.bf16.mxu1 %v2287_v45 }
 0x17f   :  { %1964 = vmatpush3.bf16.msra.mxu1 %v2287_v45 }
 0x182   :  { %1723 = vmatmul.mubr.f32.vlgmr.msra.gmra.mrb[0].mxu1 %v2345_v63 }
 0x21b   :  { %v1584_v3 = vpop.f32.mrb[2].mxu0 }
 0x21c   :  { %v830_v4 = vpop.f32.mrb[3].mxu0 }
 0x255   :  { %v1724_v5 = vpop.f32.mrb[0].mxu1 }
 0x256   :  { %v1965_v24 = vadd.f32 %v1724_v5, %v1584_v3  ;;  %v1256_v1 = vpop.f32.mrb[1].mxu1 }
 0x257   :  { %v1966_v32 = vadd.f32 %v1256_v1, %v830_v4 }
 0x258   :  { %1271 = vst.msk [vmem:[#allocation2 + $0x8] sm:$0xff] %vm21_vm0, %v1965_v24 }
 0x259   :  { %1270 = vst.msk [vmem:[#allocation2] sm:$0xff] %vm21_vm0, %v1966_v32 }
 0x25f   :  { %v1286_v40 = vld [vmem:[#allocation2 + $0x8] sm:$0xff] }
 0x260   :  { %v1285_v44 = vld [vmem:[#allocation2] sm:$0xff]  ;;  %1288 = vst.msk [vmem:[#allocation3 + $0x8] sm:$0xff] %vm21_vm0, %v1286_v40 }
 0x261   :  { %1287 = vst.msk [vmem:[#allocation3] sm:$0xff] %vm21_vm0, %v1285_v44 }
 0x262   :  { %2003 = shalt.err (!%p2000_p4)
}
 0x263   :  { %s2004_s29 = scalar_lea.hbm %s2436_s3, 256 }
 0x264   :  { %p2005_p5 = scmp.ne.s32.totalorder %s2436_s3, %s2004_s29  ;;  %p2008_p6 = scmp.lt.u32.totalorder %s2004_s29, %s2436_s3 }
 0x266   :  { %p2010_p7 = pnand %p2008_p6, %p2005_p5 }
 0x268   :  { %2013 = shalt.err (!%p2010_p7)
}
 0x269   :  { %s2017_s7 = smov 128   ;;  %s2018_s8 = smov 8  }
 0x26a   :  { %1300 = dma.vmem_to_hbm [thread:$0]  %s1295_s25, 256, %s2436_s3, [#allocation4], %s2017_s7, %s2017_s7, %s2018_s8  }
 0x26b   :  { %2014 = dma.done.wait [#allocation4], 256  }
 0x26c   :  { %2015 = vsyncadd [#allocation4], 4294967040 }
 0x26d   :  { %1304 = vsyncpa [#allocation4], 1 }

</bundles_post_ra>
